<compile_context>
chip_gen: v5e
topology: v5e:2x2
jax: 0.10.0
libtpu: 0.0.40
codegen_flags: <defaults>
</compile_context>

<pallas_src>
import functools
import math

import jax
import jax.numpy as jnp
from jax.experimental import pallas as pl
from jax.experimental.pallas import tpu as pltpu


def _log_softmax_f32(logits):
    """Numerically stable log-softmax over the last (lane) axis, in f32."""
    m = jnp.max(logits, axis=-1, keepdims=True)
    shifted = logits - m
    lse = jnp.log(jnp.sum(jnp.exp(shifted), axis=-1, keepdims=True))
    return shifted - lse


# ---------------------------------------------------------------------------
# Single-step cell (matches RNN.forward): in-kernel combine + ONE fused matmul.
# ---------------------------------------------------------------------------
def _rnn_cell_kernel(x_ref, h_ref, w_ref, b_ref, out_ref, hid_ref, comb_ref,
                     *, input_size, hidden_size):
    I, H = input_size, hidden_size

    # combined = [x | h] built directly in VMEM scratch (no wrapper concat).
    comb_ref[:, :I] = x_ref[...].astype(jnp.float32)
    comb_ref[:, I:] = h_ref[...].astype(jnp.float32)

    # z = [x, h] @ [Wh^T | Wo^T] + [bh | bo]     -> (B, H+O), single MXU push.
    z = (jnp.dot(comb_ref[...], w_ref[...], preferred_element_type=jnp.float32)
         + b_ref[...])

    hidden = z[:, :H]                              # (B, H)
    logits = z[:, H:]                              # (B, O)

    out_ref[...] = _log_softmax_f32(logits).astype(out_ref.dtype)
    hid_ref[...] = hidden.astype(hid_ref.dtype)


def rnn_forward(x, h, prep):
    """Single RNN step.  x: (B, I), h: (B, H) -> (log_probs (B, O), hidden (B, H))."""
    B, I = x.shape
    H = prep["hidden_size"]
    O = prep["output_size"]

    full = lambda shape: pl.BlockSpec(shape, lambda: (0,) * len(shape))
    kernel = functools.partial(_rnn_cell_kernel, input_size=I, hidden_size=H)

    out, hid = pl.pallas_call(
        kernel,
        out_shape=(jax.ShapeDtypeStruct((B, O), x.dtype),
                   jax.ShapeDtypeStruct((B, H), x.dtype)),
        grid=(),
        in_specs=[full((B, I)),                  # x
                  full((B, H)),                  # h
                  full((I + H, H + O)),          # fused weight
                  full((1, H + O))],             # fused bias
        out_specs=(full((B, O)), full((B, H))),
        scratch_shapes=[pltpu.VMEM((B, I + H), jnp.float32)],   # combined buffer
    )(x, h, prep["w_fused"], prep["b_fused"])
    return out, hid


# ---------------------------------------------------------------------------
# Sequence-fused version: whole recurrence in ONE pallas_call, grid=().
# Everything is VMEM-resident; hidden carry lives in vregs across a statically
# unrolled T loop; one fused MXU push per step; outputs DMA'd back once.
# ---------------------------------------------------------------------------
def _rnn_seq_kernel(x_ref, h0_ref, w_ref, b_ref, out_ref, hid_ref, comb_ref,
                    *, input_size, hidden_size, seq_len):
    I, H = input_size, hidden_size

    h = h0_ref[...].astype(jnp.float32)            # carry in vregs, f32

    for t in range(seq_len):                       # static unroll (T small & fixed)
        comb_ref[:, :I] = x_ref[t].astype(jnp.float32)   # lanes [0, I)
        comb_ref[:, I:] = h                              # lanes [I, I+H)

        z = (jnp.dot(comb_ref[...], w_ref[...],
                     preferred_element_type=jnp.float32)
             + b_ref[...])                         # (B, H+O), single MXU push

        h = z[:, :H]                               # new hidden carry (f32)
        out_ref[t] = _log_softmax_f32(z[:, H:]).astype(out_ref.dtype)

    hid_ref[...] = h.astype(hid_ref.dtype)         # final hidden, written once


def rnn_forward_sequence(x_seq, h0, prep):
    """x_seq: (T, B, I), h0: (B, H) -> (log_probs (T, B, O), final hidden (B, H))."""
    T, B, I = x_seq.shape
    H = prep["hidden_size"]
    O = prep["output_size"]

    full = lambda shape: pl.BlockSpec(shape, lambda: (0,) * len(shape))
    kernel = functools.partial(_rnn_seq_kernel, input_size=I, hidden_size=H,
                               seq_len=T)

    out_seq, hid = pl.pallas_call(
        kernel,
        out_shape=(jax.ShapeDtypeStruct((T, B, O), x_seq.dtype),
                   jax.ShapeDtypeStruct((B, H), x_seq.dtype)),
        grid=(),
        in_specs=[full((T, B, I)),                 # whole sequence, resident
                  full((B, H)),                    # h0
                  full((I + H, H + O)),            # fused weight, resident
                  full((1, H + O))],               # fused bias, resident
        out_specs=(full((T, B, O)),                # all log-probs, single writeback
                   full((B, H))),                  # final hidden
        scratch_shapes=[pltpu.VMEM((B, I + H), jnp.float32)],   # combined buffer
    )(x_seq, h0, prep["w_fused"], prep["b_fused"])
    return out_seq, hid


# ---------------------------------------------------------------------------
# One-time parameter preparation (hoisted out of the per-step call).
# ---------------------------------------------------------------------------
def prepare_params(params, input_size):
    w_i2h, b_i2h = params["w_i2h"], params["b_i2h"]   # (H, I+H), (H,)
    w_i2o, b_i2o = params["w_i2o"], params["b_i2o"]   # (O, I+H), (O,)
    hidden_size = w_i2h.shape[0]
    output_size = w_i2o.shape[0]

    # PyTorch Linear stores (out, in); transpose and pack column-wise:
    #   W_fused = [Wh^T | Wo^T]  : (I+H, H+O)
    w_fused = jnp.concatenate([w_i2h.T, w_i2o.T], axis=1)
    b_fused = jnp.concatenate([b_i2h, b_i2o]).reshape(1, hidden_size + output_size)

    # TODO(synk): for realistic sizes, pad (H+O) to a multiple of 128 lanes here
    # (pad logit columns masked to -inf in-kernel) and cast to bf16 on v6e/v7x.
    return {
        "input_size": input_size,
        "hidden_size": hidden_size,
        "output_size": output_size,
        "w_fused": w_fused,                    # (I+H, H+O)
        "b_fused": b_fused,                    # (1,   H+O)
    }


def init_params(key, input_size, hidden_size, output_size):
    """Deterministic PyTorch-Linear-style init: U(-1/sqrt(fan_in), 1/sqrt(fan_in))."""
    ks = jax.random.split(key, 4)
    fan_in = input_size + hidden_size
    bound = 1.0 / math.sqrt(fan_in)
    u = lambda k, shape: jax.random.uniform(k, shape, jnp.float32, -bound, bound)
    return {
        "w_i2h": u(ks[0], (hidden_size, fan_in)),
        "b_i2h": u(ks[1], (hidden_size,)),
        "w_i2o": u(ks[2], (output_size, fan_in)),
        "b_i2o": u(ks[3], (output_size,)),
    }


if __name__ == "__main__":
    key = jax.random.PRNGKey(0)
    k_x, k_p, k_seq = jax.random.split(key, 3)

    batch = 2
    input_size = 16
    hidden_size = 32
    output_size = 8
    seq_len = 8

    x = jax.random.normal(k_x, (batch, input_size), jnp.float32)
    h0 = jnp.zeros((batch, hidden_size), jnp.float32)   # RNN.init_hidden() analogue
    params = init_params(k_p, input_size, hidden_size, output_size)
    prep = prepare_params(params, input_size)            # one-time weight packing

    # ---- single-step forward (matches RNN.forward) ----
    out, hidden = rnn_forward(x, h0, prep)
    jax.block_until_ready((out, hidden))

    combined = jnp.concatenate([x, h0], axis=1)
    ref_hidden = combined @ params["w_i2h"].T + params["b_i2h"]
    ref_logits = combined @ params["w_i2o"].T + params["b_i2o"]
    ref_out = jax.nn.log_softmax(ref_logits, axis=1)
    assert jnp.allclose(out, ref_out, atol=1e-5), "log-softmax output mismatch"
    assert jnp.allclose(hidden, ref_hidden, atol=1e-5), "hidden mismatch"

    # ---- sequence-fused forward (whole recurrence in one pallas_call) ----
    x_seq = jax.random.normal(k_seq, (seq_len, batch, input_size), jnp.float32)
    out_seq, hid_seq = rnn_forward_sequence(x_seq, h0, prep)
    jax.block_until_ready((out_seq, hid_seq))

    h_ref = h0
    ref_outs = []
    for t in range(seq_len):
        comb_t = jnp.concatenate([x_seq[t], h_ref], axis=1)
        logits_t = comb_t @ params["w_i2o"].T + params["b_i2o"]
        h_ref = comb_t @ params["w_i2h"].T + params["b_i2h"]
        ref_outs.append(jax.nn.log_softmax(logits_t, axis=1))
    ref_out_seq = jnp.stack(ref_outs)
    assert jnp.allclose(out_seq, ref_out_seq, atol=1e-4), "sequence output mismatch"
    assert jnp.allclose(hid_seq, h_ref, atol=1e-4), "sequence final hidden mismatch"

    print("KERNEL_OK")
</pallas_src>

<mosaic_0001>
module attributes {stable_mosaic.version = 11 : i64} {
  func.func @_rnn_cell_kernel(%arg0: memref<2x16xf32, #tpu.memory_space<vmem>>, %arg1: memref<2x32xf32, #tpu.memory_space<vmem>>, %arg2: memref<48x40xf32, #tpu.memory_space<vmem>>, %arg3: memref<1x40xf32, #tpu.memory_space<vmem>>, %arg4: memref<2x8xf32, #tpu.memory_space<vmem>>, %arg5: memref<2x32xf32, #tpu.memory_space<vmem>>, %arg6: memref<2x48xf32, #tpu.memory_space<vmem>>) attributes {dimension_semantics = [], scalar_prefetch = 0 : i64, scratch_operands = 1 : i64, tpu.core_type = #tpu.core_type<tc>} {
    %c0 = arith.constant 0 : index
    %c0_0 = arith.constant 0 : index
    %0 = vector.load %arg0[%c0, %c0_0] : memref<2x16xf32, #tpu.memory_space<vmem>>, vector<2x16xf32>
    %c0_1 = arith.constant 0 : index
    %c0_2 = arith.constant 0 : index
    %1 = vector.load %arg6[%c0_1, %c0_2] : memref<2x48xf32, #tpu.memory_space<vmem>>, vector<2x16xf32>
    tpu.vector_store %arg6[%c0_1, %c0_2], %0 {strides = array<i32>} : memref<2x48xf32, #tpu.memory_space<vmem>>, vector<2x16xf32>,
    %c0_3 = arith.constant 0 : index
    %c0_4 = arith.constant 0 : index
    %2 = vector.load %arg1[%c0_3, %c0_4] : memref<2x32xf32, #tpu.memory_space<vmem>>, vector<2x32xf32>
    %c0_5 = arith.constant 0 : index
    %c16 = arith.constant 16 : index
    %3 = vector.load %arg6[%c0_5, %c16] : memref<2x48xf32, #tpu.memory_space<vmem>>, vector<2x32xf32>
    tpu.vector_store %arg6[%c0_5, %c16], %2 {strides = array<i32>} : memref<2x48xf32, #tpu.memory_space<vmem>>, vector<2x32xf32>,
    %c0_6 = arith.constant 0 : index
    %c0_7 = arith.constant 0 : index
    %4 = vector.load %arg6[%c0_6, %c0_7] : memref<2x48xf32, #tpu.memory_space<vmem>>, vector<2x48xf32>
    %c0_8 = arith.constant 0 : index
    %c0_9 = arith.constant 0 : index
    %5 = vector.load %arg2[%c0_8, %c0_9] : memref<48x40xf32, #tpu.memory_space<vmem>>, vector<48x40xf32>
    %cst = arith.constant dense<0.000000e+00> : vector<2x40xf32>
    %6 = tpu.matmul %4, %5, %cst {dimension_numbers = #tpu.dot_dimension_numbers<[1], [0], [0], [1], [0, 0, 1, 1], [], []>} : vector<2x48xf32>, vector<48x40xf32>, vector<2x40xf32> -> vector<2x40xf32>
    %c0_10 = arith.constant 0 : index
    %c0_11 = arith.constant 0 : index
    %7 = vector.load %arg3[%c0_10, %c0_11] : memref<1x40xf32, #tpu.memory_space<vmem>>, vector<1x40xf32>
    %8 = vector.broadcast %7 : vector<1x40xf32> to vector<2x40xf32>
    %9 = arith.addf %6, %8 : vector<2x40xf32>
    %10 = vector.extract_strided_slice %9 {offsets = [0, 0], sizes = [2, 32], strides = [1, 1]} : vector<2x40xf32> to vector<2x32xf32>
    %11 = vector.extract_strided_slice %9 {offsets = [0, 32], sizes = [2, 8], strides = [1, 1]} : vector<2x40xf32> to vector<2x8xf32>
    %cst_12 = arith.constant dense<0xFF800000> : vector<2xf32>
    %12 = vector.multi_reduction <maximumf>, %11, %cst_12 [1] : vector<2x8xf32> to vector<2xf32>
    %13 = vector.shape_cast %12 : vector<2xf32> to vector<2x1xf32>
    %14 = vector.broadcast %13 : vector<2x1xf32> to vector<2x8xf32>
    %15 = arith.subf %11, %14 : vector<2x8xf32>
    %16 = math.exp %15 : vector<2x8xf32>
    %cst_13 = arith.constant dense<0.000000e+00> : vector<2xf32>
    %17 = vector.multi_reduction <add>, %16, %cst_13 [1] : vector<2x8xf32> to vector<2xf32>
    %18 = vector.shape_cast %17 : vector<2xf32> to vector<2x1xf32>
    %19 = math.log %18 : vector<2x1xf32>
    %20 = vector.broadcast %19 : vector<2x1xf32> to vector<2x8xf32>
    %21 = arith.subf %15, %20 : vector<2x8xf32>
    %c0_14 = arith.constant 0 : index
    %c0_15 = arith.constant 0 : index
    %22 = vector.load %arg4[%c0_14, %c0_15] : memref<2x8xf32, #tpu.memory_space<vmem>>, vector<2x8xf32>
    tpu.vector_store %arg4[%c0_14, %c0_15], %21 {strides = array<i32>} : memref<2x8xf32, #tpu.memory_space<vmem>>, vector<2x8xf32>,
    %c0_16 = arith.constant 0 : index
    %c0_17 = arith.constant 0 : index
    %23 = vector.load %arg5[%c0_16, %c0_17] : memref<2x32xf32, #tpu.memory_space<vmem>>, vector<2x32xf32>
    tpu.vector_store %arg5[%c0_16, %c0_17], %10 {strides = array<i32>} : memref<2x32xf32, #tpu.memory_space<vmem>>, vector<2x32xf32>,
    return
  }
}

</mosaic_0001>

<bundles_post_ra>
// kernel: tpu_custom_call.1
= control target key start
LH: loop header
LB: loop body
LE: loop exit
PB: predicated region body
PF: predicated region fallthrough
CT: control target
= control target key end

     0   :  { %11 = vsyncpa [#allocation4], 0  ;;  %s185_s24 = smov 16   ;;  %s254_s0 = inlined_call_operand.vmem [shape: f32[2,16], index: 0, kind: input, shape index: {}]   ;;  %s255_s1 = inlined_call_operand.vmem [shape: f32[2,32], index: 1, kind: input, shape index: {}]   ;;  %s256_s2 = inlined_call_operand.vmem [shape: f32[48,40], index: 2, kind: input, shape index: {}]   ;;  %s257_s3 = inlined_call_operand.vmem [shape: f32[1,40], index: 3, kind: input, shape index: {}]   ;;  %s258_s4 = inlined_call_operand.hbm [shape: f32[2,8], index: 4, kind: output, shape index: {0}]   ;;  %s259_s5 = inlined_call_operand.hbm [shape: f32[2,32], index: 5, kind: output, shape index: {1}]  }
   0x1   :  { %v24_v0 = vld [vmem:[%s255_s1] sm:$0x3]  ;;  %v37_v1 = vld [vmem:[%s256_s2 + $0x28] sm:$0xff] }
   0x2   :  { %v36_v2 = vld [vmem:[%s256_s2 + $0x20] sm:$0xff]  ;;  %26 = vrot.lane.b32.xlu0 %v24_v0, %s185_s24  ;;  %56 = vmatpush.msra.mxu0 %v37_v1 }
   0x3   :  { %12 = vsyncpa [#allocation6], 0  ;;  %v21_v3 = vld [vmem:[%s254_s0] sm:$0x3]  ;;  %vm22_vm0 = vcmask 123904   ;;  %v35_v4 = vld [vmem:[%s256_s2 + $0x18] sm:$0xff] }
   0x4   :  { %57 = vmatpush.msra.mxu0 %v36_v2  ;;  %23 = vst.msk [vmem:[#allocation2] sm:$0x3] %vm22_vm0, %v21_v3  ;;  %v34_v5 = vld [vmem:[%s256_s2 + $0x10] sm:$0xff]  ;;  %v33_v6 = vld [vmem:[%s256_s2 + $0x8] sm:$0xff]  ;;  %v32_v7 = vld [vmem:[%s256_s2] sm:$0xff]  ;;  %vm29_vm1 = vcmask 386176  }
   0x5   :  { %vm42_vm2 = vcmask 392192   ;;  %v128_v10 = vld [vmem:[%s257_s3] ss:$0 sm:$0xff]  ;;  %vm66_vm3 = vcmask 320768   ;;  %vm89_vm4 = vcmask 254976   ;;  %s186_s2 = smov 96  }
   0x6   :  { %58 = vmatpush.msra.mxu0 %v35_v4  ;;  %vm77_vm5 = vcmask 58368   ;;  %s187_s3 = smov [#allocation5]   ;;  %s109_s13 = sshll.u32 %s259_s5, 4  ;;  %s110_s13 = int_to_ptr.hbm [resolvable:$true] %s109_s13 }
   0x7   :  { %s107_s10 = sshll.u32 %s187_s3, 4  ;;  %s188_s14 = smov [#allocation3]   ;;  %s108_s10 = int_to_ptr.vmem [resolvable:$true] %s107_s10 }
   0x8   :  { %59 = vmatpush.msra.mxu0 %v34_v5  ;;  %s96_s15 = sshll.u32 %s188_s14, 4  ;;  %s98_s18 = sshll.u32 %s258_s4, 4  ;;  %s97_s15 = int_to_ptr.vmem [resolvable:$true] %s96_s15  ;;  %s99_s18 = int_to_ptr.hbm [resolvable:$true] %s98_s18 }
   0xa   :  { %60 = vmatpush.msra.mxu0 %v33_v6 }
   0xc   :  { %61 = vmatpush.msra.mxu0 %v32_v7 }
  0x74   :  { %v27_v8 = vpop.permute.xlu0 %26 }
  0x75   :  { %30 = vst.msk [vmem:[#allocation2] sm:$0x3] %vm29_vm1, %v27_v8 }
  0x7c   :  { %v31_v9 = vld [vmem:[#allocation2] sm:$0x3] }
  0x7d   :  { %123 = vmatmul.msk.f32.vlgmr.msra.gmra.mxu0 %vm42_vm2, %v31_v9 }
  0xfa   :  { %v63_v11 = vpop.f32.mrf.mxu0 }
  0xfb   :  { %v64_v12 = vadd.f32 %v128_v10, %v63_v11 }
  0xfd   :  { %v67_v13 = vsel %vm66_vm3, %v64_v12, -inf  ;;  %90 = vst.msk [vmem:[#allocation5] sm:$0x3] %vm89_vm4, %v64_v12 }
  0xfe   :  { %68 = vmax.xlane.f32.xlu0 %v67_v13  ;;  %112 = dma.vmem_to_hbm [thread:$0]  %s108_s10, 32, %s110_s13, [#allocation6]  }
 0x171   :  { %v69_v14 = vpop.xlane.xlu0 %68 }
 0x172   :  { %v70_v15 = vsub.f32 %v64_v12, %v69_v14 }
 0x174   :  { %v71_v16 = vmul.f32 1.442695, %v70_v15 }
 0x176   :  { %129 = vpow2.f32 %v71_v16 }
 0x17c   :  { %v130_v17 = vpop.eup %129 }
 0x17d   :  { %74 = vrot.lane.b32.xlu1 %v130_v17, %s186_s2 }
 0x1ef   :  { %v75_v18 = vpop.permute.xlu1 %74 }
 0x1f0   :  { %v78_v19 = vsel %vm77_vm5, %v75_v18, 0.0 }
 0x1f1   :  { %79 = vadd.xlane.f32.xlu1 %v78_v19 }
 0x264   :  { %v80_v20 = vpop.xlane.xlu1 %79 }
 0x265   :  { %131 = vlog2.f32 %v80_v20 }
 0x26b   :  { %v132_v21 = vpop.eup %131 }
 0x26c   :  { %v82_v22 = vmul.f32 0.6931472, %v132_v21 }
 0x26e   :  { %v83_v23 = vsub.f32 %v70_v15, %v82_v22 }
 0x270   :  { %85 = vrot.lane.b32.xlu2 %v83_v23, %s186_s2 }
 0x2ca   :  { %v86_v24 = vpop.permute.xlu2 %85 }
 0x2cb   :  { %88 = vst.msk [vmem:[#allocation3] sm:$0x3] %vm77_vm5, %v86_v24 }
 0x2cc   :  { %101 = dma.vmem_to_hbm [thread:$0]  %s97_s15, 32, %s99_s18, [#allocation4]  }
 0x2cd   :  { %181 = dma.done.wait [#allocation4], 32  }
 0x2ce   :  { %182 = vsyncadd [#allocation4], 4294967264 }
 0x2cf   :  { %183 = dma.done.wait [#allocation6], 32  }
 0x2d0   :  { %184 = vsyncadd [#allocation6], 4294967264 }
 0x2d1   :  { %121 = vsyncpa [#allocation4], 1 }
 0x2d2   :  { %122 = vsyncpa [#allocation6], 1 }

</bundles_post_ra>
